<compile_context>
chip_gen: v5e
topology: v5e:2x2
jax: 0.10.0
libtpu: 0.0.40
codegen_flags: <defaults>
</compile_context>

<pallas_src>
from functools import partial

import jax
import jax.numpy as jnp
from jax.experimental import pallas as pl
from jax.experimental.pallas import tpu as pltpu

_LANE = 128     # vreg lane width
_SUBLANE = 8    # vreg sublane count (f32)


def _round_up(n, m):
    return (n + m - 1) // m * m


def _mlp_kernel(x_ref, w1_ref, b1_ref, w2_ref, b2_ref, o_ref):
    # layer 1: bf16 MXU matmul, f32 accumulation; bias + relu on the VPU
    h = jnp.dot(x_ref[...], w1_ref[...], preferred_element_type=jnp.float32)
    h = jnp.maximum(h + b1_ref[...], 0.0).astype(jnp.bfloat16)
    # layer 2: bf16 MXU matmul, f32 accumulation; lane-dense f32 store
    y = jnp.dot(h, w2_ref[...], preferred_element_type=jnp.float32)
    o_ref[...] = (y + b2_ref[...]).astype(o_ref.dtype)


@partial(jax.jit, static_argnames=("batch_tile",))
def linear_qnet_forward(x, w1, b1, w2, b2, *, batch_tile=256):
    """Fused 2-layer MLP forward pass.

    x:  [B, in]           float32
    w1: [in, hidden]      (stored transposed vs PyTorch so kernel does x @ W)
    b1: [1, hidden]
    w2: [hidden, out]
    b2: [1, out]
    returns [B, out] float32
    """
    B, IN = x.shape
    HID = w1.shape[1]
    OUT = w2.shape[1]

    # Pad feature dims to the 128-lane tile and batch to the 8-sublane tile.
    IN_p = _round_up(IN, _LANE)
    HID_p = _round_up(HID, _LANE)
    OUT_p = _round_up(OUT, _LANE)
    B8 = _round_up(B, _SUBLANE)
    tb = min(B8, batch_tile)           # batch tile (multiple of 8)
    B_p = _round_up(B8, tb)
    n_tiles = B_p // tb

    # Zero-pad operands; padded hidden/out columns stay exactly zero
    # (relu(0 + 0) = 0, zero W2 rows), so math is unchanged after slicing.
    x_p = jnp.zeros((B_p, IN_p), jnp.bfloat16).at[:B, :IN].set(
        x.astype(jnp.bfloat16))
    w1_p = jnp.zeros((IN_p, HID_p), jnp.bfloat16).at[:IN, :HID].set(
        w1.astype(jnp.bfloat16))
    b1_p = jnp.zeros((1, HID_p), jnp.float32).at[:, :HID].set(
        b1.astype(jnp.float32))
    w2_p = jnp.zeros((HID_p, OUT_p), jnp.bfloat16).at[:HID, :OUT].set(
        w2.astype(jnp.bfloat16))
    b2_p = jnp.zeros((1, OUT_p), jnp.float32).at[:, :OUT].set(
        b2.astype(jnp.float32))

    out_p = pl.pallas_call(
        _mlp_kernel,
        out_shape=jax.ShapeDtypeStruct((B_p, OUT_p), jnp.float32),
        grid=(n_tiles,),
        in_specs=[
            # activations stream over the batch grid axis
            pl.BlockSpec((tb, IN_p), lambda i: (i, 0)),
            # weights / biases stay VMEM-resident across all grid steps
            pl.BlockSpec((IN_p, HID_p), lambda i: (0, 0)),
            pl.BlockSpec((1, HID_p), lambda i: (0, 0)),
            pl.BlockSpec((HID_p, OUT_p), lambda i: (0, 0)),
            pl.BlockSpec((1, OUT_p), lambda i: (0, 0)),
        ],
        out_specs=pl.BlockSpec((tb, OUT_p), lambda i: (i, 0)),
        compiler_params=pltpu.CompilerParams(
            dimension_semantics=("parallel",)),
    )(x_p, w1_p, b1_p, w2_p, b2_p)

    return out_p[:B, :OUT]


def init_linear_qnet_params(key, input_size, hidden_size, output_size):
    """nn.Linear-style init (uniform +/- 1/sqrt(fan_in)), weights stored [in, out]."""
    k1, k2, k3, k4, k5, k6 = jax.random.split(key, 6)

    def uinit(k, shape, fan_in):
        bound = 1.0 / jnp.sqrt(float(fan_in))
        return jax.random.uniform(k, shape, jnp.float32, -bound, bound)

    w1 = uinit(k1, (input_size, hidden_size), input_size)
    b1 = uinit(k2, (1, hidden_size), input_size)
    w2 = uinit(k3, (hidden_size, output_size), hidden_size)
    b2 = uinit(k4, (1, output_size), hidden_size)
    # linear3 is defined in the PyTorch module but unused in forward().
    w3 = uinit(k5, (output_size, output_size), output_size)
    b3 = uinit(k6, (1, output_size), output_size)
    return dict(w1=w1, b1=b1, w2=w2, b2=b2, w3=w3, b3=b3)


if __name__ == "__main__":
    # Snake-agent style Q-net shapes (input=11, hidden=256, output=3); batch
    # of 512 states per call so the kernel has >1 grid step and the per-call
    # launch cost is amortized, per the perf review.
    B, IN, HID, OUT = 512, 11, 256, 3

    key = jax.random.PRNGKey(0)
    kx, kp = jax.random.split(key)
    x = jax.random.normal(kx, (B, IN), jnp.float32)
    params = init_linear_qnet_params(kp, IN, HID, OUT)

    out = linear_qnet_forward(x, params["w1"], params["b1"],
                              params["w2"], params["b2"])
    out = jax.block_until_ready(out)
    assert out.shape == (B, OUT)

    # Reference 1: same bf16-operand / f32-accumulation math as the kernel.
    xb = x.astype(jnp.bfloat16)
    w1b = params["w1"].astype(jnp.bfloat16)
    w2b = params["w2"].astype(jnp.bfloat16)
    h_ref = jnp.maximum(
        jnp.dot(xb, w1b, preferred_element_type=jnp.float32) + params["b1"], 0.0)
    ref_bf16 = jnp.dot(h_ref.astype(jnp.bfloat16), w2b,
                       preferred_element_type=jnp.float32) + params["b2"]
    assert jnp.allclose(out, ref_bf16, atol=2e-3, rtol=2e-3)

    # Reference 2: pure-f32 math (looser tolerance for the bf16 matmul path).
    ref_f32 = (jnp.maximum(x @ params["w1"] + params["b1"], 0.0)
               @ params["w2"] + params["b2"])
    assert jnp.allclose(out, ref_f32, atol=5e-2, rtol=5e-2)

    print("KERNEL_OK")
</pallas_src>

<mosaic_0001>
module attributes {stable_mosaic.version = 11 : i64} {
  func.func @_mlp_kernel(%arg0: i32, %arg1: memref<256x128xbf16, #tpu.memory_space<vmem>>, %arg2: memref<128x256xbf16, #tpu.memory_space<vmem>>, %arg3: memref<1x256xf32, #tpu.memory_space<vmem>>, %arg4: memref<256x128xbf16, #tpu.memory_space<vmem>>, %arg5: memref<1x128xf32, #tpu.memory_space<vmem>>, %arg6: memref<256x128xf32, #tpu.memory_space<vmem>>) attributes {dimension_semantics = [#tpu.dimension_semantics<parallel>], iteration_bounds = array<i64: 2>, scalar_prefetch = 0 : i64, scratch_operands = 0 : i64, tpu.core_type = #tpu.core_type<tc>, window_params = [{transform_indices = @transform_0, window_bounds = array<i64: 256, 128>}, {pipeline_mode = #tpu.pipeline_mode<synchronous>, transform_indices = @transform_1, window_bounds = array<i64: 128, 256>}, {pipeline_mode = #tpu.pipeline_mode<synchronous>, transform_indices = @transform_2, window_bounds = array<i64: 1, 256>}, {pipeline_mode = #tpu.pipeline_mode<synchronous>, transform_indices = @transform_3, window_bounds = array<i64: 256, 128>}, {pipeline_mode = #tpu.pipeline_mode<synchronous>, transform_indices = @transform_4, window_bounds = array<i64: 1, 128>}, {transform_indices = @transform_5, window_bounds = array<i64: 256, 128>}]} {
    %c0 = arith.constant 0 : index
    %c0_0 = arith.constant 0 : index
    %0 = vector.load %arg1[%c0, %c0_0] : memref<256x128xbf16, #tpu.memory_space<vmem>>, vector<256x128xbf16>
    %c0_1 = arith.constant 0 : index
    %c0_2 = arith.constant 0 : index
    %1 = vector.load %arg2[%c0_1, %c0_2] : memref<128x256xbf16, #tpu.memory_space<vmem>>, vector<128x256xbf16>
    %cst = arith.constant dense<0.000000e+00> : vector<256x256xf32>
    %2 = tpu.matmul %0, %1, %cst {dimension_numbers = #tpu.dot_dimension_numbers<[1], [0], [0], [1], [0, 0, 1, 1], [], []>} : vector<256x128xbf16>, vector<128x256xbf16>, vector<256x256xf32> -> vector<256x256xf32>
    %c0_3 = arith.constant 0 : index
    %c0_4 = arith.constant 0 : index
    %3 = vector.load %arg3[%c0_3, %c0_4] : memref<1x256xf32, #tpu.memory_space<vmem>>, vector<1x256xf32>
    %4 = vector.broadcast %3 : vector<1x256xf32> to vector<256x256xf32>
    %5 = arith.addf %2, %4 : vector<256x256xf32>
    %cst_5 = arith.constant 0.000000e+00 : f32
    %6 = vector.broadcast %cst_5 : f32 to vector<256x256xf32>
    %7 = arith.maximumf %5, %6 : vector<256x256xf32>
    %8 = arith.truncf %7 : vector<256x256xf32> to vector<256x256xbf16>
    %c0_6 = arith.constant 0 : index
    %c0_7 = arith.constant 0 : index
    %9 = vector.load %arg4[%c0_6, %c0_7] : memref<256x128xbf16, #tpu.memory_space<vmem>>, vector<256x128xbf16>
    %cst_8 = arith.constant dense<0.000000e+00> : vector<256x128xf32>
    %10 = tpu.matmul %8, %9, %cst_8 {dimension_numbers = #tpu.dot_dimension_numbers<[1], [0], [0], [1], [0, 0, 1, 1], [], []>} : vector<256x256xbf16>, vector<256x128xbf16>, vector<256x128xf32> -> vector<256x128xf32>
    %c0_9 = arith.constant 0 : index
    %c0_10 = arith.constant 0 : index
    %11 = vector.load %arg5[%c0_9, %c0_10] : memref<1x128xf32, #tpu.memory_space<vmem>>, vector<1x128xf32>
    %12 = vector.broadcast %11 : vector<1x128xf32> to vector<256x128xf32>
    %13 = arith.addf %10, %12 : vector<256x128xf32>
    %c0_11 = arith.constant 0 : index
    %c0_12 = arith.constant 0 : index
    %14 = vector.load %arg6[%c0_11, %c0_12] : memref<256x128xf32, #tpu.memory_space<vmem>>, vector<256x128xf32>
    tpu.vector_store %arg6[%c0_11, %c0_12], %13 {strides = array<i32>} : memref<256x128xf32, #tpu.memory_space<vmem>>, vector<256x128xf32>,
    return
  }
  func.func @transform_0(%arg0: i32) -> (i32, i32) {
    %c0_i32 = arith.constant 0 : i32
    %c0_i32_0 = arith.constant 0 : i32
    return %arg0, %c0_i32 : i32, i32
  }
  func.func @transform_1(%arg0: i32) -> (i32, i32) {
    %c0_i32 = arith.constant 0 : i32
    %c0_i32_0 = arith.constant 0 : i32
    %c0_i32_1 = arith.constant 0 : i32
    return %c0_i32, %c0_i32_0 : i32, i32
  }
  func.func @transform_2(%arg0: i32) -> (i32, i32) {
    %c0_i32 = arith.constant 0 : i32
    %c0_i32_0 = arith.constant 0 : i32
    %c0_i32_1 = arith.constant 0 : i32
    return %c0_i32, %c0_i32_0 : i32, i32
  }
  func.func @transform_3(%arg0: i32) -> (i32, i32) {
    %c0_i32 = arith.constant 0 : i32
    %c0_i32_0 = arith.constant 0 : i32
    %c0_i32_1 = arith.constant 0 : i32
    return %c0_i32, %c0_i32_0 : i32, i32
  }
  func.func @transform_4(%arg0: i32) -> (i32, i32) {
    %c0_i32 = arith.constant 0 : i32
    %c0_i32_0 = arith.constant 0 : i32
    %c0_i32_1 = arith.constant 0 : i32
    return %c0_i32, %c0_i32_0 : i32, i32
  }
  func.func @transform_5(%arg0: i32) -> (i32, i32) {
    %c0_i32 = arith.constant 0 : i32
    %c0_i32_0 = arith.constant 0 : i32
    return %arg0, %c0_i32 : i32, i32
  }
}

</mosaic_0001>

<bundles_post_ra>
// kernel: linear_qnet_forward.1
= control target key start
LH: loop header
LB: loop body
LE: loop exit
PB: predicated region body
PF: predicated region fallthrough
CT: control target
= control target key end

     0   :  { %s1428_s18 = smov 0   ;;  %s1755_s0 = inlined_call_operand.vmem [shape: bf16[512,128], index: 0, kind: input, shape index: {}]   ;;  %s1756_s1 = inlined_call_operand.vmem [shape: bf16[128,256], index: 1, kind: input, shape index: {}]   ;;  %s1757_s2 = inlined_call_operand.vmem [shape: f32[1,256], index: 2, kind: input, shape index: {}]   ;;  %s1758_s3 = inlined_call_operand.vmem [shape: bf16[256,128], index: 3, kind: input, shape index: {}]   ;;  %s1759_s4 = inlined_call_operand.vmem [shape: f32[1,128], index: 4, kind: input, shape index: {}]   ;;  %s1760_s5 = inlined_call_operand.vmem [shape: f32[512,128], index: 5, kind: output, shape index: {}]  }
   0x1 LB: > { %s1130_s19 = sadd.s32 4294967295, %s1396_s18   ;;  %p1134_p0 = scmp.ge.s32.totalorder %s1396_s18, 1  ;;  %s1396_s18 = sphi %s1428_s18, %s15_s18  }
   0x2   : > { %p188_p1 = scmp.lt.s32.totalorder %s1396_s18, 3 }
   0x4   : > { %p189_p2 = pnand %p1134_p0, %p188_p1 }
   0x5   : > { %s1135_s12 = sshll.u32 (!%p189_p2), %s1130_s19, 5 }
   0x6   : > { %192 = sbr.rel (%p189_p2) target bundleno = 570 (0x23a), region = 40  ;;  %p217_p3 = scmp.lt.s32.totalorder (!%p189_p2), %s1135_s12, 63 }
   0xb   : > { %v1261_v0 = vld [vmem:[%s1756_s1 + $0x70] sm:$0xf]  ;;  %v1364_v1 = vld [vmem:[%s1756_s1 + $0x74] sm:$0xf0]  ;;  %v1363_v2 = vld [vmem:[%s1756_s1 + $0x74] sm:$0xf] }
   0xc   : > { %v1262_v3 = vor.u32 %v1364_v1, %v1261_v0  ;;  %v1263_v4 = vld [vmem:[%s1756_s1 + $0x78] sm:$0xf0]  ;;  %v1253_v5 = vld [vmem:[%s1756_s1 + $0x60] sm:$0xf]  ;;  %v1362_v6 = vld [vmem:[%s1756_s1 + $0x64] sm:$0xf0] }
   0xd   : > { %v1266_v7 = vor.u32 %v1363_v2, %v1263_v4  ;;  %v1361_v8 = vld [vmem:[%s1756_s1 + $0x64] sm:$0xf]  ;;  %v1255_v9 = vld [vmem:[%s1756_s1 + $0x68] sm:$0xf0]  ;;  %v1254_v10 = vor.u32 %v1362_v6, %v1253_v5  ;;  %v1245_v12 = vld [vmem:[%s1756_s1 + $0x50] sm:$0xf] }
   0xe   : > { %458 = vmatpush.bf16.msra.mxu0 %v1262_v3  ;;  %v1258_v11 = vor.u32 %v1361_v8, %v1255_v9  ;;  %v1360_v13 = vld [vmem:[%s1756_s1 + $0x54] sm:$0xf0]  ;;  %v1359_v14 = vld [vmem:[%s1756_s1 + $0x54] sm:$0xf]  ;;  %v1247_v15 = vld [vmem:[%s1756_s1 + $0x58] sm:$0xf0] }
   0xf   : > { %547 = vmatpush.bf16.msra.mxu1 %v1266_v7  ;;  %v1246_v16 = vor.u32 %v1360_v13, %v1245_v12  ;;  %v1250_v17 = vor.u32 %v1359_v14, %v1247_v15  ;;  %v1237_v18 = vld [vmem:[%s1756_s1 + $0x40] sm:$0xf]  ;;  %v1358_v19 = vld [vmem:[%s1756_s1 + $0x44] sm:$0xf0]  ;;  %v1357_v20 = vld [vmem:[%s1756_s1 + $0x44] sm:$0xf] }
  0x10   : > { %v1239_v21 = vld [vmem:[%s1756_s1 + $0x48] sm:$0xf0]  ;;  %v1238_v22 = vor.u32 %v1358_v19, %v1237_v18  ;;  %v1229_v24 = vld [vmem:[%s1756_s1 + $0x30] sm:$0xf]  ;;  %v1356_v25 = vld [vmem:[%s1756_s1 + $0x34] sm:$0xf0] }
  0x11   : > { %v1242_v23 = vor.u32 %v1357_v20, %v1239_v21  ;;  %v1355_v26 = vld [vmem:[%s1756_s1 + $0x34] sm:$0xf]  ;;  %v1231_v27 = vld [vmem:[%s1756_s1 + $0x38] sm:$0xf0]  ;;  %v1230_v28 = vor.u32 %v1356_v25, %v1229_v24  ;;  %v1221_v30 = vld [vmem:[%s1756_s1 + $0x20] sm:$0xf] }
  0x12   : > { %459 = vmatpush.bf16.msra.mxu0 %v1254_v10  ;;  %v1234_v29 = vor.u32 %v1355_v26, %v1231_v27  ;;  %v1354_v31 = vld [vmem:[%s1756_s1 + $0x24] sm:$0xf0]  ;;  %v1353_v32 = vld [vmem:[%s1756_s1 + $0x24] sm:$0xf]  ;;  %v1223_v33 = vld [vmem:[%s1756_s1 + $0x28] sm:$0xf0] }
  0x13   : > { %548 = vmatpush.bf16.msra.mxu1 %v1258_v11  ;;  %v1222_v34 = vor.u32 %v1354_v31, %v1221_v30  ;;  %v1226_v35 = vor.u32 %v1353_v32, %v1223_v33  ;;  %v1213_v36 = vld [vmem:[%s1756_s1 + $0x10] sm:$0xf]  ;;  %v1352_v37 = vld [vmem:[%s1756_s1 + $0x14] sm:$0xf0]  ;;  %s1762_s12 = smov (!%p217_p3, %s1135_s12), 63  ;;  %v1370_v58 = vld [vmem:[%s1758_s3 + $0x28] sm:$0xff] }
  0x14   : > { %v1351_v38 = vld [vmem:[%s1756_s1 + $0x14] sm:$0xf]  ;;  %v1215_v39 = vld [vmem:[%s1756_s1 + $0x18] sm:$0xf0]  ;;  %v1214_v40 = vor.u32 %v1352_v37, %v1213_v36  ;;  %v1205_v42 = vld [vmem:[%s1756_s1] sm:$0xf] }
  0x15   : > { %v1218_v41 = vor.u32 %v1351_v38, %v1215_v39  ;;  %v1350_v43 = vld [vmem:[%s1756_s1 + $0x4] sm:$0xf0]  ;;  %s1136_s9 = sshll.u32 %s1762_s12, 2  ;;  %v1349_v44 = vld [vmem:[%s1756_s1 + $0x4] sm:$0xf]  ;;  %v1372_v53 = vld [vmem:[%s1758_s3 + $0x38] sm:$0xff] }
  0x16   : > { %460 = vmatpush.bf16.msra.mxu0 %v1246_v16  ;;  %v1207_v45 = vld [vmem:[%s1756_s1 + $0x8] sm:$0xf0]  ;;  %v1206_v46 = vor.u32 %v1350_v43, %v1205_v42  ;;  %s1540_s17 = scalar_lea.vmem %s1755_s0, %s1136_s9  ;;  %v1380_v54 = vld [vmem:[%s1758_s3 + $0x78] sm:$0xff]  ;;  %864 = vmatpush.bf16.msra.mxu2 %v1372_v53  ;;  %v1371_v56 = vld [vmem:[%s1758_s3 + $0x30] sm:$0xff]  ;;  %s1138_s7 = sshll.u32 %s1762_s12, 3 }
  0x17   : > { %549 = vmatpush.bf16.msra.mxu1 %v1250_v17  ;;  %v1210_v47 = vor.u32 %v1349_v44, %v1207_v45  ;;  %v1333_v48 = vld [vmem:[%s1540_s17] sm:$0xff]  ;;  %v1334_v49 = vld [vmem:[%s1540_s17 + $0x8] sm:$0xff]  ;;  %v1335_v50 = vld [vmem:[%s1540_s17 + $0x10] sm:$0xff]  ;;  %953 = vmatpush.bf16.msra.mxu3 %v1380_v54  ;;  %s1659_s10 = scalar_lea.vmem %s1760_s5, %s1138_s7 }
  0x18   : > { %v1336_v51 = vld [vmem:[%s1540_s17 + $0x18] sm:$0xff]  ;;  %v1337_v52 = vld [vmem:[%s1540_s17 + $0x20] sm:$0xff]  ;;  %v1338_v55 = vld [vmem:[%s1540_s17 + $0x28] sm:$0xff] }
  0x19   : > { %v1379_v57 = vld [vmem:[%s1758_s3 + $0x70] sm:$0xff]  ;;  %v1378_v59 = vld [vmem:[%s1758_s3 + $0x68] sm:$0xff]  ;;  %v1369_v60 = vld [vmem:[%s1758_s3 + $0x20] sm:$0xff] }
  0x1a   : > { %461 = vmatpush.bf16.msra.mxu0 %v1238_v22  ;;  %865 = vmatpush.bf16.msra.mxu2 %v1371_v56  ;;  %v1377_v61 = vld [vmem:[%s1758_s3 + $0x60] sm:$0xff]  ;;  %v1339_v62 = vld [vmem:[%s1540_s17 + $0x30] sm:$0xff]  ;;  %v1368_v63 = vld [vmem:[%s1758_s3 + $0x18] sm:$0xff] }
  0x1b   : > { %550 = vmatpush.bf16.msra.mxu1 %v1242_v23  ;;  %954 = vmatpush.bf16.msra.mxu3 %v1379_v57  ;;  %v1376_v0 = vld [vmem:[%s1758_s3 + $0x58] sm:$0xff]  ;;  %v1367_v1 = vld [vmem:[%s1758_s3 + $0x10] sm:$0xff]  ;;  %v1366_v3 = vld [vmem:[%s1758_s3 + $0x8] sm:$0xff] }
  0x1c   : > { %v1375_v2 = vld [vmem:[%s1758_s3 + $0x50] sm:$0xff]  ;;  %v1374_v4 = vld [vmem:[%s1758_s3 + $0x48] sm:$0xff]  ;;  %v1365_v5 = vld [vmem:[%s1758_s3] sm:$0xff] }
  0x1d   : > { %v1373_v6 = vld [vmem:[%s1758_s3 + $0x40] sm:$0xff]  ;;  %v1340_v7 = vld [vmem:[%s1540_s17 + $0x38] sm:$0xff]  ;;  %v1342_v26 = vld [vmem:[%s1540_s17 + $0x48] sm:$0xff] }
  0x1e   : > { %462 = vmatpush.bf16.msra.mxu0 %v1230_v28  ;;  %866 = vmatpush.bf16.msra.mxu2 %v1370_v58  ;;  %v1341_v8 = vld [vmem:[%s1540_s17 + $0x40] sm:$0xff]  ;;  %v1344_v56 = vld [vmem:[%s1540_s17 + $0x58] sm:$0xff] }
  0x1f   : > { %551 = vmatpush.bf16.msra.mxu1 %v1234_v29  ;;  %955 = vmatpush.bf16.msra.mxu3 %v1378_v59  ;;  %v276_v9 = vld [vmem:[%s1757_s2] sm:$0x3] }
  0x20   : > { %v1602_v12 = vperm.slane %v276_v9, 0  ;;  %v1604_v13 = vperm.slane %v276_v9, 1 }
  0x22   : > { %463 = vmatpush.bf16.msra.mxu0 %v1222_v34  ;;  %867 = vmatpush.bf16.msra.mxu2 %v1369_v60 }
  0x23   : > { %552 = vmatpush.bf16.msra.mxu1 %v1226_v35  ;;  %956 = vmatpush.bf16.msra.mxu3 %v1377_v61 }
  0x26   : > { %464 = vmatpush.bf16.msra.mxu0 %v1214_v40  ;;  %868 = vmatpush.bf16.msra.mxu2 %v1368_v63 }
  0x27   : > { %553 = vmatpush.bf16.msra.mxu1 %v1218_v41  ;;  %957 = vmatpush.bf16.msra.mxu3 %v1376_v0  ;;  %v1343_v41 = vld [vmem:[%s1540_s17 + $0x50] sm:$0xff] }
  0x2a   : > { %465 = vmatpush.bf16.msra.mxu0 %v1206_v46  ;;  %869 = vmatpush.bf16.msra.mxu2 %v1367_v1 }
  0x2b   : > { %554 = vmatpush.bf16.msra.mxu1 %v1210_v47  ;;  %958 = vmatpush.bf16.msra.mxu3 %v1375_v2 }
  0x2d   : > { %466 = vmatmul.bf16.vlgmr.msra.gmra.mxu0 %v1333_v48 }
  0x2e   : > { %555 = vmatmul.bf16.vlgmr.msra.gmra.mxu1 %v1333_v48  ;;  %870 = vmatpush.bf16.msra.mxu2 %v1366_v3 }
  0x2f   : > { %959 = vmatpush.bf16.msra.mxu3 %v1374_v4 }
  0x32   : > { %871 = vmatpush.bf16.msra.mxu2 %v1365_v5 }
  0x33   : > { %960 = vmatpush.bf16.msra.mxu3 %v1373_v6 }
  0x3d   : > { %471 = vmatmul.bf16.gmra.mxu0 %v1334_v49 }
  0x3e   : > { %560 = vmatmul.bf16.gmra.mxu1 %v1334_v49 }
  0x4d   : > { %476 = vmatmul.bf16.gmra.mxu0 %v1335_v50 }
  0x4e   : > { %565 = vmatmul.bf16.gmra.mxu1 %v1335_v50 }
  0x5d   : > { %481 = vmatmul.bf16.gmra.mxu0 %v1336_v51 }
  0x5e   : > { %570 = vmatmul.bf16.gmra.mxu1 %v1336_v51 }
  0x6d   : > { %486 = vmatmul.bf16.gmra.mxu0 %v1337_v52 }
  0x6e   : > { %575 = vmatmul.bf16.gmra.mxu1 %v1337_v52 }
  0x7d   : > { %491 = vmatmul.bf16.gmra.mxu0 %v1338_v55 }
  0x7e   : > { %580 = vmatmul.bf16.gmra.mxu1 %v1338_v55 }
  0x8d   : > { %496 = vmatmul.bf16.gmra.mxu0 %v1339_v62 }
  0x8e   : > { %585 = vmatmul.bf16.gmra.mxu1 %v1339_v62 }
  0x9d   : > { %501 = vmatmul.bf16.gmra.mxu0 %v1340_v7 }
  0x9e   : > { %590 = vmatmul.bf16.gmra.mxu1 %v1340_v7  ;;  %v1345_v7 = vld [vmem:[%s1540_s17 + $0x60] sm:$0xff] }
  0xaa   : > { %v467_v10 = vpop.f32.mrf.mxu0 }
  0xab   : > { %v556_v11 = vpop.f32.mrf.mxu1  ;;  %v468_v14 = vadd.f32 %v467_v10, %v1602_v12 }
  0xac   : > { %v557_v15 = vadd.f32 %v556_v11, %v1604_v13 }
  0xad   : > { %506 = vmatmul.bf16.gmra.mxu0 %v1341_v8  ;;  %v636_v20 = vmax.f32 %v468_v14, 0.0 }
  0xae   : > { %595 = vmatmul.bf16.gmra.mxu1 %v1341_v8  ;;  %v637_v22 = vmax.f32 %v557_v15, 0.0 }
  0xb2   : > { %v469_v16 = vpop.f32.mrf.mxu0 }
  0xb3   : > { %v470_v17 = vadd.f32 %v469_v16, %v1602_v12  ;;  %v558_v18 = vpop.f32.mrf.mxu1 }
  0xb4   : > { %v559_v19 = vadd.f32 %v558_v18, %v1604_v13 }
  0xb5   : > { %v638_v21 = vmax.f32 %v470_v17, 0.0 }
  0xb6   : > { %v639_v23 = vmax.f32 %v559_v19, 0.0 }
  0xb7   : > { %v700_v24 = vpack.c.bf16 %v638_v21, %v636_v20 }
  0xb8   : > { %v701_v25 = vpack.c.bf16 %v639_v23, %v637_v22 }
  0xb9   : > { %872 = vmatmul.bf16.vlgmr.msra.gmra.mxu2 %v700_v24  ;;  %v1346_v24 = vld [vmem:[%s1540_s17 + $0x68] sm:$0xff] }
  0xba   : > { %961 = vmatmul.bf16.vlgmr.msra.gmra.mxu3 %v701_v25  ;;  %v472_v27 = vpop.f32.mrf.mxu0 }
  0xbb   : > { %v561_v28 = vpop.f32.mrf.mxu1  ;;  %v473_v29 = vadd.f32 %v472_v27, %v1602_v12 }
  0xbc   : > { %v562_v30 = vadd.f32 %v561_v28, %v1604_v13 }
  0xbd   : > { %511 = vmatmul.bf16.gmra.mxu0 %v1342_v26  ;;  %v640_v35 = vmax.f32 %v473_v29, 0.0 }
  0xbe   : > { %600 = vmatmul.bf16.gmra.mxu1 %v1342_v26  ;;  %v641_v37 = vmax.f32 %v562_v30, 0.0 }
  0xc2   : > { %v474_v31 = vpop.f32.mrf.mxu0 }
  0xc3   : > { %v475_v32 = vadd.f32 %v474_v31, %v1602_v12  ;;  %v563_v33 = vpop.f32.mrf.mxu1 }
  0xc4   : > { %v564_v34 = vadd.f32 %v563_v33, %v1604_v13 }
  0xc5   : > { %v642_v36 = vmax.f32 %v475_v32, 0.0 }
  0xc6   : > { %v643_v38 = vmax.f32 %v564_v34, 0.0 }
  0xc7   : > { %v702_v39 = vpack.c.bf16 %v642_v36, %v640_v35 }
  0xc8   : > { %v703_v40 = vpack.c.bf16 %v643_v38, %v641_v37 }
  0xc9   : > { %877 = vmatmul.bf16.gmra.mxu2 %v702_v39  ;;  %v1347_v39 = vld [vmem:[%s1540_s17 + $0x70] sm:$0xff] }
  0xca   : > { %966 = vmatmul.bf16.gmra.mxu3 %v703_v40  ;;  %v477_v42 = vpop.f32.mrf.mxu0 }
  0xcb   : > { %v566_v43 = vpop.f32.mrf.mxu1  ;;  %v478_v44 = vadd.f32 %v477_v42, %v1602_v12 }
  0xcc   : > { %v567_v45 = vadd.f32 %v566_v43, %v1604_v13 }
  0xcd   : > { %516 = vmatmul.bf16.gmra.mxu0 %v1343_v41  ;;  %v644_v50 = vmax.f32 %v478_v44, 0.0 }
  0xce   : > { %605 = vmatmul.bf16.gmra.mxu1 %v1343_v41  ;;  %v645_v52 = vmax.f32 %v567_v45, 0.0 }
  0xd2   : > { %v479_v46 = vpop.f32.mrf.mxu0 }
  0xd3   : > { %v480_v47 = vadd.f32 %v479_v46, %v1602_v12  ;;  %v568_v48 = vpop.f32.mrf.mxu1 }
  0xd4   : > { %v569_v49 = vadd.f32 %v568_v48, %v1604_v13 }
  0xd5   : > { %v646_v51 = vmax.f32 %v480_v47, 0.0 }
  0xd6   : > { %v647_v53 = vmax.f32 %v569_v49, 0.0 }
  0xd7   : > { %v704_v54 = vpack.c.bf16 %v646_v51, %v644_v50 }
  0xd8   : > { %v705_v55 = vpack.c.bf16 %v647_v53, %v645_v52 }
  0xd9   : > { %882 = vmatmul.bf16.gmra.mxu2 %v704_v54  ;;  %v1348_v54 = vld [vmem:[%s1540_s17 + $0x78] sm:$0xff] }
  0xda   : > { %971 = vmatmul.bf16.gmra.mxu3 %v705_v55  ;;  %v482_v57 = vpop.f32.mrf.mxu0 }
  0xdb   : > { %v571_v58 = vpop.f32.mrf.mxu1  ;;  %v483_v59 = vadd.f32 %v482_v57, %v1602_v12 }
  0xdc   : > { %v572_v60 = vadd.f32 %v571_v58, %v1604_v13 }
  0xdd   : > { %521 = vmatmul.bf16.gmra.mxu0 %v1344_v56  ;;  %v648_v1 = vmax.f32 %v483_v59, 0.0 }
  0xde   : > { %610 = vmatmul.bf16.gmra.mxu1 %v1344_v56  ;;  %v649_v3 = vmax.f32 %v572_v60, 0.0 }
  0xe2   : > { %v484_v61 = vpop.f32.mrf.mxu0 }
  0xe3   : > { %v485_v62 = vadd.f32 %v484_v61, %v1602_v12  ;;  %v573_v63 = vpop.f32.mrf.mxu1 }
  0xe4   : > { %v574_v0 = vadd.f32 %v573_v63, %v1604_v13 }
  0xe5   : > { %v650_v2 = vmax.f32 %v485_v62, 0.0 }
  0xe6   : > { %v651_v4 = vmax.f32 %v574_v0, 0.0 }
  0xe7   : > { %v706_v5 = vpack.c.bf16 %v650_v2, %v648_v1 }
  0xe8   : > { %v707_v6 = vpack.c.bf16 %v651_v4, %v649_v3 }
  0xe9   : > { %887 = vmatmul.bf16.gmra.mxu2 %v706_v5 }
  0xea   : > { %976 = vmatmul.bf16.gmra.mxu3 %v707_v6  ;;  %v487_v8 = vpop.f32.mrf.mxu0 }
  0xeb   : > { %v576_v9 = vpop.f32.mrf.mxu1  ;;  %v488_v10 = vadd.f32 %v487_v8, %v1602_v12 }
  0xec   : > { %v577_v11 = vadd.f32 %v576_v9, %v1604_v13 }
  0xed   : > { %526 = vmatmul.bf16.gmra.mxu0 %v1345_v7  ;;  %v652_v18 = vmax.f32 %v488_v10, 0.0 }
  0xee   : > { %615 = vmatmul.bf16.gmra.mxu1 %v1345_v7  ;;  %v653_v20 = vmax.f32 %v577_v11, 0.0 }
  0xf2   : > { %v489_v14 = vpop.f32.mrf.mxu0 }
  0xf3   : > { %v490_v15 = vadd.f32 %v489_v14, %v1602_v12  ;;  %v578_v16 = vpop.f32.mrf.mxu1 }
  0xf4   : > { %v579_v17 = vadd.f32 %v578_v16, %v1604_v13 }
  0xf5   : > { %v654_v19 = vmax.f32 %v490_v15, 0.0 }
  0xf6   : > { %v655_v21 = vmax.f32 %v579_v17, 0.0 }
  0xf7   : > { %v708_v22 = vpack.c.bf16 %v654_v19, %v652_v18 }
  0xf8   : > { %v709_v23 = vpack.c.bf16 %v655_v21, %v653_v20  ;;  %v1652_v21 = vld [vmem:[%s1759_s4] ss:$0 sm:$0xff] }
  0xf9   : > { %892 = vmatmul.bf16.gmra.mxu2 %v708_v22 }
  0xfa   : > { %981 = vmatmul.bf16.gmra.mxu3 %v709_v23  ;;  %v492_v25 = vpop.f32.mrf.mxu0 }
  0xfb   : > { %v581_v26 = vpop.f32.mrf.mxu1  ;;  %v493_v27 = vadd.f32 %v492_v25, %v1602_v12 }
  0xfc   : > { %v582_v28 = vadd.f32 %v581_v26, %v1604_v13 }
  0xfd   : > { %531 = vmatmul.bf16.gmra.mxu0 %v1346_v24  ;;  %v656_v33 = vmax.f32 %v493_v27, 0.0 }
  0xfe   : > { %620 = vmatmul.bf16.gmra.mxu1 %v1346_v24  ;;  %v657_v35 = vmax.f32 %v582_v28, 0.0 }
 0x102   : > { %v494_v29 = vpop.f32.mrf.mxu0 }
 0x103   : > { %v495_v30 = vadd.f32 %v494_v29, %v1602_v12  ;;  %v583_v31 = vpop.f32.mrf.mxu1 }
 0x104   : > { %v584_v32 = vadd.f32 %v583_v31, %v1604_v13 }
 0x105   : > { %v658_v34 = vmax.f32 %v495_v30, 0.0 }
 0x106   : > { %v659_v36 = vmax.f32 %v584_v32, 0.0 }
 0x107   : > { %v710_v37 = vpack.c.bf16 %v658_v34, %v656_v33 }
 0x108   : > { %v711_v38 = vpack.c.bf16 %v659_v36, %v657_v35 }
 0x109   : > { %897 = vmatmul.bf16.gmra.mxu2 %v710_v37 }
 0x10a   : > { %986 = vmatmul.bf16.gmra.mxu3 %v711_v38  ;;  %v497_v40 = vpop.f32.mrf.mxu0 }
 0x10b   : > { %v586_v41 = vpop.f32.mrf.mxu1  ;;  %v498_v42 = vadd.f32 %v497_v40, %v1602_v12 }
 0x10c   : > { %v587_v43 = vadd.f32 %v586_v41, %v1604_v13 }
 0x10d   : > { %536 = vmatmul.bf16.gmra.mxu0 %v1347_v39  ;;  %v660_v48 = vmax.f32 %v498_v42, 0.0 }
 0x10e   : > { %625 = vmatmul.bf16.gmra.mxu1 %v1347_v39  ;;  %v661_v50 = vmax.f32 %v587_v43, 0.0 }
 0x112   : > { %v499_v44 = vpop.f32.mrf.mxu0 }
 0x113   : > { %v500_v45 = vadd.f32 %v499_v44, %v1602_v12  ;;  %v588_v46 = vpop.f32.mrf.mxu1 }
 0x114   : > { %v589_v47 = vadd.f32 %v588_v46, %v1604_v13 }
 0x115   : > { %v662_v49 = vmax.f32 %v500_v45, 0.0 }
 0x116   : > { %v663_v51 = vmax.f32 %v589_v47, 0.0 }
 0x117   : > { %v712_v52 = vpack.c.bf16 %v662_v49, %v660_v48 }
 0x118   : > { %v713_v53 = vpack.c.bf16 %v663_v51, %v661_v50 }
 0x119   : > { %902 = vmatmul.bf16.gmra.mxu2 %v712_v52 }
 0x11a   : > { %991 = vmatmul.bf16.gmra.mxu3 %v713_v53  ;;  %v502_v55 = vpop.f32.mrf.mxu0 }
 0x11b   : > { %v591_v56 = vpop.f32.mrf.mxu1  ;;  %v503_v57 = vadd.f32 %v502_v55, %v1602_v12 }
 0x11c   : > { %v592_v58 = vadd.f32 %v591_v56, %v1604_v13 }
 0x11d   : > { %541 = vmatmul.bf16.gmra.mxu0 %v1348_v54  ;;  %v664_v63 = vmax.f32 %v503_v57, 0.0 }
 0x11e   : > { %630 = vmatmul.bf16.gmra.mxu1 %v1348_v54  ;;  %v665_v1 = vmax.f32 %v592_v58, 0.0 }
 0x122   : > { %v504_v59 = vpop.f32.mrf.mxu0 }
 0x123   : > { %v505_v60 = vadd.f32 %v504_v59, %v1602_v12  ;;  %v593_v61 = vpop.f32.mrf.mxu1 }
 0x124   : > { %v594_v62 = vadd.f32 %v593_v61, %v1604_v13 }
 0x125   : > { %v666_v0 = vmax.f32 %v505_v60, 0.0 }
 0x126   : > { %v667_v2 = vmax.f32 %v594_v62, 0.0 }
 0x127   : > { %v714_v3 = vpack.c.bf16 %v666_v0, %v664_v63 }
 0x128   : > { %v715_v4 = vpack.c.bf16 %v667_v2, %v665_v1 }
 0x129   : > { %907 = vmatmul.bf16.gmra.mxu2 %v714_v3 }
 0x12a   : > { %996 = vmatmul.bf16.gmra.mxu3 %v715_v4  ;;  %v507_v5 = vpop.f32.mrf.mxu0 }
 0x12b   : > { %v596_v6 = vpop.f32.mrf.mxu1  ;;  %v508_v7 = vadd.f32 %v507_v5, %v1602_v12 }
 0x12c   : > { %v597_v8 = vadd.f32 %v596_v6, %v1604_v13 }
 0x12d   : > { %v668_v15 = vmax.f32 %v508_v7, 0.0 }
 0x12e   : > { %v669_v17 = vmax.f32 %v597_v8, 0.0 }
 0x132   : > { %v509_v9 = vpop.f32.mrf.mxu0 }
 0x133   : > { %v510_v10 = vadd.f32 %v509_v9, %v1602_v12  ;;  %v598_v11 = vpop.f32.mrf.mxu1 }
 0x134   : > { %v599_v14 = vadd.f32 %v598_v11, %v1604_v13 }
 0x135   : > { %v670_v16 = vmax.f32 %v510_v10, 0.0 }
 0x136   : > { %v671_v18 = vmax.f32 %v599_v14, 0.0 }
 0x137   : > { %v716_v19 = vpack.c.bf16 %v670_v16, %v668_v15 }
 0x138   : > { %v717_v20 = vpack.c.bf16 %v671_v18, %v669_v17 }
 0x139   : > { %912 = vmatmul.bf16.gmra.mxu2 %v716_v19 }
 0x13a   : > { %1001 = vmatmul.bf16.gmra.mxu3 %v717_v20  ;;  %v512_v22 = vpop.f32.mrf.mxu0 }
 0x13b   : > { %v601_v23 = vpop.f32.mrf.mxu1  ;;  %v513_v28 = vadd.f32 %v512_v22, %v1602_v12 }
 0x13c   : > { %v873_v24 = vpop.f32.mrf.mxu2  ;;  %v602_v29 = vadd.f32 %v601_v23, %v1604_v13 }
 0x13d   : > { %v874_v25 = vadd.f32 %v1652_v21, %v873_v24  ;;  %v962_v26 = vpop.f32.mrf.mxu3  ;;  %v672_v35 = vmax.f32 %v513_v28, 0.0 }
 0x13e   : > { %v673_v39 = vmax.f32 %v602_v29, 0.0 }
 0x13f   : > { %v963_v27 = vadd.f32 %v962_v26, %v874_v25 }
 0x141   : > { %1042 = vst [vmem:[%s1659_s10] sm:$0xff] %v963_v27 }
 0x142   : > { %v514_v30 = vpop.f32.mrf.mxu0 }
 0x143   : > { %v515_v31 = vadd.f32 %v514_v30, %v1602_v12  ;;  %v603_v32 = vpop.f32.mrf.mxu1 }
 0x144   : > { %v604_v33 = vadd.f32 %v603_v32, %v1604_v13  ;;  %v875_v34 = vpop.f32.mrf.mxu2 }
 0x145   : > { %v674_v36 = vmax.f32 %v515_v31, 0.0  ;;  %v876_v37 = vadd.f32 %v1652_v21, %v875_v34  ;;  %v964_v38 = vpop.f32.mrf.mxu3 }
 0x146   : > { %v675_v40 = vmax.f32 %v604_v33, 0.0 }
 0x147   : > { %v965_v41 = vadd.f32 %v964_v38, %v876_v37  ;;  %v718_v42 = vpack.c.bf16 %v674_v36, %v672_v35 }
 0x148   : > { %v719_v43 = vpack.c.bf16 %v675_v40, %v673_v39 }
 0x149   : > { %1043 = vst [vmem:[%s1659_s10 + $0x8] sm:$0xff] %v965_v41  ;;  %917 = vmatmul.bf16.gmra.mxu2 %v718_v42 }
 0x14a   : > { %1006 = vmatmul.bf16.gmra.mxu3 %v719_v43  ;;  %v517_v44 = vpop.f32.mrf.mxu0 }
 0x14b   : > { %v606_v45 = vpop.f32.mrf.mxu1  ;;  %v518_v50 = vadd.f32 %v517_v44, %v1602_v12 }
 0x14c   : > { %v878_v46 = vpop.f32.mrf.mxu2  ;;  %v607_v51 = vadd.f32 %v606_v45, %v1604_v13 }
 0x14d   : > { %v879_v47 = vadd.f32 %v1652_v21, %v878_v46  ;;  %v967_v48 = vpop.f32.mrf.mxu3  ;;  %v676_v57 = vmax.f32 %v518_v50, 0.0 }
 0x14e   : > { %v677_v61 = vmax.f32 %v607_v51, 0.0 }
 0x14f   : > { %v968_v49 = vadd.f32 %v967_v48, %v879_v47 }
 0x151   : > { %1044 = vst [vmem:[%s1659_s10 + $0x10] sm:$0xff] %v968_v49 }
 0x152   : > { %v519_v52 = vpop.f32.mrf.mxu0 }
 0x153   : > { %v520_v53 = vadd.f32 %v519_v52, %v1602_v12  ;;  %v608_v54 = vpop.f32.mrf.mxu1 }
 0x154   : > { %v609_v55 = vadd.f32 %v608_v54, %v1604_v13  ;;  %v880_v56 = vpop.f32.mrf.mxu2 }
 0x155   : > { %v678_v58 = vmax.f32 %v520_v53, 0.0  ;;  %v881_v59 = vadd.f32 %v1652_v21, %v880_v56  ;;  %v969_v60 = vpop.f32.mrf.mxu3 }
 0x156   : > { %v679_v62 = vmax.f32 %v609_v55, 0.0 }
 0x157   : > { %v970_v63 = vadd.f32 %v969_v60, %v881_v59  ;;  %v720_v0 = vpack.c.bf16 %v678_v58, %v676_v57 }
 0x158   : > { %v721_v1 = vpack.c.bf16 %v679_v62, %v677_v61 }
 0x159   : > { %1045 = vst [vmem:[%s1659_s10 + $0x18] sm:$0xff] %v970_v63  ;;  %922 = vmatmul.bf16.gmra.mxu2 %v720_v0 }
 0x15a   : > { %1011 = vmatmul.bf16.gmra.mxu3 %v721_v1  ;;  %v522_v2 = vpop.f32.mrf.mxu0 }
 0x15b   : > { %v611_v3 = vpop.f32.mrf.mxu1  ;;  %v523_v8 = vadd.f32 %v522_v2, %v1602_v12 }
 0x15c   : > { %v883_v4 = vpop.f32.mrf.mxu2  ;;  %v612_v9 = vadd.f32 %v611_v3, %v1604_v13 }
 0x15d   : > { %v884_v5 = vadd.f32 %v1652_v21, %v883_v4  ;;  %v972_v6 = vpop.f32.mrf.mxu3  ;;  %v680_v17 = vmax.f32 %v523_v8, 0.0 }
 0x15e   : > { %v681_v22 = vmax.f32 %v612_v9, 0.0 }
 0x15f   : > { %v973_v7 = vadd.f32 %v972_v6, %v884_v5 }
 0x161   : > { %1046 = vst [vmem:[%s1659_s10 + $0x20] sm:$0xff] %v973_v7 }
 0x162   : > { %v524_v10 = vpop.f32.mrf.mxu0 }
 0x163   : > { %v525_v11 = vadd.f32 %v524_v10, %v1602_v12  ;;  %v613_v14 = vpop.f32.mrf.mxu1 }
 0x164   : > { %v614_v15 = vadd.f32 %v613_v14, %v1604_v13  ;;  %v885_v16 = vpop.f32.mrf.mxu2 }
 0x165   : > { %v682_v18 = vmax.f32 %v525_v11, 0.0  ;;  %v886_v19 = vadd.f32 %v1652_v21, %v885_v16  ;;  %v974_v20 = vpop.f32.mrf.mxu3 }
 0x166   : > { %v683_v23 = vmax.f32 %v614_v15, 0.0 }
 0x167   : > { %v975_v24 = vadd.f32 %v974_v20, %v886_v19  ;;  %v722_v25 = vpack.c.bf16 %v682_v18, %v680_v17 }
 0x168   : > { %v723_v26 = vpack.c.bf16 %v683_v23, %v681_v22 }
 0x169   : > { %1047 = vst [vmem:[%s1659_s10 + $0x28] sm:$0xff] %v975_v24  ;;  %927 = vmatmul.bf16.gmra.mxu2 %v722_v25 }
 0x16a   : > { %1016 = vmatmul.bf16.gmra.mxu3 %v723_v26  ;;  %v527_v27 = vpop.f32.mrf.mxu0 }
 0x16b   : > { %v616_v28 = vpop.f32.mrf.mxu1  ;;  %v528_v33 = vadd.f32 %v527_v27, %v1602_v12 }
 0x16c   : > { %v888_v29 = vpop.f32.mrf.mxu2  ;;  %v617_v34 = vadd.f32 %v616_v28, %v1604_v13 }
 0x16d   : > { %v889_v30 = vadd.f32 %v1652_v21, %v888_v29  ;;  %v977_v31 = vpop.f32.mrf.mxu3  ;;  %v684_v40 = vmax.f32 %v528_v33, 0.0 }
 0x16e   : > { %v685_v44 = vmax.f32 %v617_v34, 0.0 }
 0x16f   : > { %v978_v32 = vadd.f32 %v977_v31, %v889_v30 }
 0x171   : > { %1048 = vst [vmem:[%s1659_s10 + $0x30] sm:$0xff] %v978_v32 }
 0x172   : > { %v529_v35 = vpop.f32.mrf.mxu0 }
 0x173   : > { %v530_v36 = vadd.f32 %v529_v35, %v1602_v12  ;;  %v618_v37 = vpop.f32.mrf.mxu1 }
 0x174   : > { %v619_v38 = vadd.f32 %v618_v37, %v1604_v13  ;;  %v890_v39 = vpop.f32.mrf.mxu2 }
 0x175   : > { %v686_v41 = vmax.f32 %v530_v36, 0.0  ;;  %v891_v42 = vadd.f32 %v1652_v21, %v890_v39  ;;  %v979_v43 = vpop.f32.mrf.mxu3 }
 0x176   : > { %v687_v45 = vmax.f32 %v619_v38, 0.0 }
 0x177   : > { %v724_v46 = vpack.c.bf16 %v686_v41, %v684_v40  ;;  %v980_v47 = vadd.f32 %v979_v43, %v891_v42 }
 0x178   : > { %v725_v48 = vpack.c.bf16 %v687_v45, %v685_v44 }
 0x179   : > { %1049 = vst [vmem:[%s1659_s10 + $0x38] sm:$0xff] %v980_v47  ;;  %932 = vmatmul.bf16.gmra.mxu2 %v724_v46 }
 0x17a   : > { %1021 = vmatmul.bf16.gmra.mxu3 %v725_v48  ;;  %v532_v49 = vpop.f32.mrf.mxu0 }
 0x17b   : > { %v621_v50 = vpop.f32.mrf.mxu1  ;;  %v533_v55 = vadd.f32 %v532_v49, %v1602_v12 }
 0x17c   : > { %v893_v51 = vpop.f32.mrf.mxu2  ;;  %v622_v56 = vadd.f32 %v621_v50, %v1604_v13 }
 0x17d   : > { %v894_v52 = vadd.f32 %v1652_v21, %v893_v51  ;;  %v982_v53 = vpop.f32.mrf.mxu3  ;;  %v688_v62 = vmax.f32 %v533_v55, 0.0 }
 0x17e   : > { %v689_v2 = vmax.f32 %v622_v56, 0.0 }
 0x17f   : > { %v983_v54 = vadd.f32 %v982_v53, %v894_v52 }
 0x181   : > { %1050 = vst [vmem:[%s1659_s10 + $0x40] sm:$0xff] %v983_v54 }
 0x182   : > { %v534_v57 = vpop.f32.mrf.mxu0 }
 0x183   : > { %v535_v58 = vadd.f32 %v534_v57, %v1602_v12  ;;  %v623_v59 = vpop.f32.mrf.mxu1 }
 0x184   : > { %v624_v60 = vadd.f32 %v623_v59, %v1604_v13  ;;  %v895_v61 = vpop.f32.mrf.mxu2 }
 0x185   : > { %v690_v63 = vmax.f32 %v535_v58, 0.0  ;;  %v896_v0 = vadd.f32 %v1652_v21, %v895_v61  ;;  %v984_v1 = vpop.f32.mrf.mxu3 }
 0x186   : > { %v691_v3 = vmax.f32 %v624_v60, 0.0 }
 0x187   : > { %v726_v4 = vpack.c.bf16 %v690_v63, %v688_v62  ;;  %v985_v5 = vadd.f32 %v984_v1, %v896_v0 }
 0x188   : > { %v727_v6 = vpack.c.bf16 %v691_v3, %v689_v2 }
 0x189   : > { %1051 = vst [vmem:[%s1659_s10 + $0x48] sm:$0xff] %v985_v5  ;;  %937 = vmatmul.bf16.gmra.mxu2 %v726_v4 }
 0x18a   : > { %1026 = vmatmul.bf16.gmra.mxu3 %v727_v6  ;;  %v537_v7 = vpop.f32.mrf.mxu0 }
 0x18b   : > { %v626_v8 = vpop.f32.mrf.mxu1  ;;  %v538_v15 = vadd.f32 %v537_v7, %v1602_v12 }
 0x18c   : > { %v898_v9 = vpop.f32.mrf.mxu2  ;;  %v627_v16 = vadd.f32 %v626_v8, %v1604_v13 }
 0x18d   : > { %v899_v10 = vadd.f32 %v1652_v21, %v898_v9  ;;  %v987_v11 = vpop.f32.mrf.mxu3  ;;  %v692_v23 = vmax.f32 %v538_v15, 0.0 }
 0x18e   : > { %v693_v27 = vmax.f32 %v627_v16, 0.0 }
 0x18f   : > { %v988_v14 = vadd.f32 %v987_v11, %v899_v10 }
 0x191   : > { %1052 = vst [vmem:[%s1659_s10 + $0x50] sm:$0xff] %v988_v14 }
 0x192   : > { %v539_v17 = vpop.f32.mrf.mxu0 }
 0x193   : > { %v540_v18 = vadd.f32 %v539_v17, %v1602_v12  ;;  %v628_v19 = vpop.f32.mrf.mxu1 }
 0x194   : > { %v629_v20 = vadd.f32 %v628_v19, %v1604_v13  ;;  %v900_v22 = vpop.f32.mrf.mxu2 }
 0x195   : > { %v694_v24 = vmax.f32 %v540_v18, 0.0  ;;  %v901_v25 = vadd.f32 %v1652_v21, %v900_v22  ;;  %v989_v26 = vpop.f32.mrf.mxu3 }
 0x196   : > { %v695_v28 = vmax.f32 %v629_v20, 0.0 }
 0x197   : > { %v728_v29 = vpack.c.bf16 %v694_v24, %v692_v23  ;;  %v990_v30 = vadd.f32 %v989_v26, %v901_v25 }
 0x198   : > { %v729_v31 = vpack.c.bf16 %v695_v28, %v693_v27 }
 0x199   : > { %1053 = vst [vmem:[%s1659_s10 + $0x58] sm:$0xff] %v990_v30  ;;  %942 = vmatmul.bf16.gmra.mxu2 %v728_v29 }
 0x19a   : > { %1031 = vmatmul.bf16.gmra.mxu3 %v729_v31  ;;  %v542_v32 = vpop.f32.mrf.mxu0 }
 0x19b   : > { %v631_v33 = vpop.f32.mrf.mxu1  ;;  %v543_v38 = vadd.f32 %v542_v32, %v1602_v12 }
 0x19c   : > { %v903_v34 = vpop.f32.mrf.mxu2  ;;  %v632_v39 = vadd.f32 %v631_v33, %v1604_v13 }
 0x19d   : > { %v904_v35 = vadd.f32 %v1652_v21, %v903_v34  ;;  %v992_v36 = vpop.f32.mrf.mxu3  ;;  %v696_v45 = vmax.f32 %v543_v38, 0.0 }
 0x19e   : > { %v697_v49 = vmax.f32 %v632_v39, 0.0 }
 0x19f   : > { %v993_v37 = vadd.f32 %v992_v36, %v904_v35 }
 0x1a1   : > { %1054 = vst [vmem:[%s1659_s10 + $0x60] sm:$0xff] %v993_v37 }
 0x1a2   : > { %v544_v40 = vpop.f32.mrf.mxu0 }
 0x1a3   : > { %v545_v41 = vadd.f32 %v544_v40, %v1602_v12  ;;  %v633_v42 = vpop.f32.mrf.mxu1 }
 0x1a4   : > { %v634_v43 = vadd.f32 %v633_v42, %v1604_v13  ;;  %v905_v44 = vpop.f32.mrf.mxu2 }
 0x1a5   : > { %v698_v46 = vmax.f32 %v545_v41, 0.0  ;;  %v906_v47 = vadd.f32 %v1652_v21, %v905_v44  ;;  %v994_v48 = vpop.f32.mrf.mxu3 }
 0x1a6   : > { %v699_v50 = vmax.f32 %v634_v43, 0.0 }
 0x1a7   : > { %v730_v51 = vpack.c.bf16 %v698_v46, %v696_v45  ;;  %v995_v52 = vadd.f32 %v994_v48, %v906_v47 }
 0x1a8   : > { %v731_v53 = vpack.c.bf16 %v699_v50, %v697_v49 }
 0x1a9   : > { %1055 = vst [vmem:[%s1659_s10 + $0x68] sm:$0xff] %v995_v52  ;;  %947 = vmatmul.bf16.gmra.mxu2 %v730_v51 }
 0x1aa   : > { %1036 = vmatmul.bf16.gmra.mxu3 %v731_v53 }
 0x1ac   : > { %v908_v12 = vpop.f32.mrf.mxu2 }
 0x1ad   : > { %v909_v13 = vadd.f32 %v1652_v21, %v908_v12  ;;  %v997_v54 = vpop.f32.mrf.mxu3 }
 0x1af   : > { %v998_v55 = vadd.f32 %v997_v54, %v909_v13 }
 0x1b1   : > { %1056 = vst [vmem:[%s1659_s10 + $0x70] sm:$0xff] %v998_v55 }
 0x1b4   : > { %v910_v56 = vpop.f32.mrf.mxu2 }
 0x1b5   : > { %v911_v57 = vadd.f32 %v1652_v21, %v910_v56  ;;  %v999_v58 = vpop.f32.mrf.mxu3 }
 0x1b7   : > { %v1000_v59 = vadd.f32 %v999_v58, %v911_v57 }
 0x1b9   : > { %1057 = vst [vmem:[%s1659_s10 + $0x78] sm:$0xff] %v1000_v59 }
 0x1bc   : > { %v913_v60 = vpop.f32.mrf.mxu2 }
 0x1bd   : > { %v914_v61 = vadd.f32 %v1652_v21, %v913_v60  ;;  %v1002_v62 = vpop.f32.mrf.mxu3 }
 0x1bf   : > { %v1003_v63 = vadd.f32 %v1002_v62, %v914_v61 }
 0x1c1   : > { %1058 = vst [vmem:[%s1659_s10 + $0x80] sm:$0xff] %v1003_v63 }
 0x1c4   : > { %v915_v0 = vpop.f32.mrf.mxu2 }
 0x1c5   : > { %v916_v1 = vadd.f32 %v1652_v21, %v915_v0  ;;  %v1004_v2 = vpop.f32.mrf.mxu3 }
 0x1c7   : > { %v1005_v3 = vadd.f32 %v1004_v2, %v916_v1 }
 0x1c9   : > { %1059 = vst [vmem:[%s1659_s10 + $0x88] sm:$0xff] %v1005_v3 }
 0x1cc   : > { %v918_v4 = vpop.f32.mrf.mxu2 }
 0x1cd   : > { %v919_v5 = vadd.f32 %v1652_v21, %v918_v4  ;;  %v1007_v6 = vpop.f32.mrf.mxu3 }
 0x1cf   : > { %v1008_v7 = vadd.f32 %v1007_v6, %v919_v5 }
 0x1d1   : > { %1060 = vst [vmem:[%s1659_s10 + $0x90] sm:$0xff] %v1008_v7 }
 0x1d4   : > { %v920_v8 = vpop.f32.mrf.mxu2 }
 0x1d5   : > { %v921_v9 = vadd.f32 %v1652_v21, %v920_v8  ;;  %v1009_v10 = vpop.f32.mrf.mxu3 }
 0x1d7   : > { %v1010_v11 = vadd.f32 %v1009_v10, %v921_v9 }
 0x1d9   : > { %1061 = vst [vmem:[%s1659_s10 + $0x98] sm:$0xff] %v1010_v11 }
 0x1dc   : > { %v923_v14 = vpop.f32.mrf.mxu2 }
 0x1dd   : > { %v924_v15 = vadd.f32 %v1652_v21, %v923_v14  ;;  %v1012_v16 = vpop.f32.mrf.mxu3 }
 0x1df   : > { %v1013_v17 = vadd.f32 %v1012_v16, %v924_v15 }
 0x1e1   : > { %1062 = vst [vmem:[%s1659_s10 + $0xa0] sm:$0xff] %v1013_v17 }
 0x1e4   : > { %v925_v18 = vpop.f32.mrf.mxu2 }
 0x1e5   : > { %v926_v19 = vadd.f32 %v1652_v21, %v925_v18  ;;  %v1014_v20 = vpop.f32.mrf.mxu3 }
 0x1e7   : > { %v1015_v22 = vadd.f32 %v1014_v20, %v926_v19 }
 0x1e9   : > { %1063 = vst [vmem:[%s1659_s10 + $0xa8] sm:$0xff] %v1015_v22 }
 0x1ec   : > { %v928_v23 = vpop.f32.mrf.mxu2 }
 0x1ed   : > { %v929_v24 = vadd.f32 %v1652_v21, %v928_v23  ;;  %v1017_v25 = vpop.f32.mrf.mxu3 }
 0x1ef   : > { %v1018_v26 = vadd.f32 %v1017_v25, %v929_v24 }
 0x1f1   : > { %1064 = vst [vmem:[%s1659_s10 + $0xb0] sm:$0xff] %v1018_v26 }
 0x1f4   : > { %v930_v27 = vpop.f32.mrf.mxu2 }
 0x1f5   : > { %v931_v28 = vadd.f32 %v1652_v21, %v930_v27  ;;  %v1019_v29 = vpop.f32.mrf.mxu3 }
 0x1f7   : > { %v1020_v30 = vadd.f32 %v1019_v29, %v931_v28 }
 0x1f9   : > { %1065 = vst [vmem:[%s1659_s10 + $0xb8] sm:$0xff] %v1020_v30 }
 0x1fc   : > { %v933_v31 = vpop.f32.mrf.mxu2 }
 0x1fd   : > { %v934_v32 = vadd.f32 %v1652_v21, %v933_v31  ;;  %v1022_v33 = vpop.f32.mrf.mxu3 }
 0x1ff   : > { %v1023_v34 = vadd.f32 %v1022_v33, %v934_v32 }
 0x201   : > { %1066 = vst [vmem:[%s1659_s10 + $0xc0] sm:$0xff] %v1023_v34 }
 0x204   : > { %v935_v35 = vpop.f32.mrf.mxu2 }
 0x205   : > { %v936_v36 = vadd.f32 %v1652_v21, %v935_v35  ;;  %v1024_v37 = vpop.f32.mrf.mxu3 }
 0x207   : > { %v1025_v38 = vadd.f32 %v1024_v37, %v936_v36 }
 0x209   : > { %1067 = vst [vmem:[%s1659_s10 + $0xc8] sm:$0xff] %v1025_v38 }
 0x20c   : > { %v938_v39 = vpop.f32.mrf.mxu2 }
 0x20d   : > { %v939_v40 = vadd.f32 %v1652_v21, %v938_v39  ;;  %v1027_v41 = vpop.f32.mrf.mxu3 }
 0x20f   : > { %v1028_v42 = vadd.f32 %v1027_v41, %v939_v40 }
 0x211   : > { %1068 = vst [vmem:[%s1659_s10 + $0xd0] sm:$0xff] %v1028_v42 }
 0x214   : > { %v940_v43 = vpop.f32.mrf.mxu2 }
 0x215   : > { %v941_v44 = vadd.f32 %v1652_v21, %v940_v43  ;;  %v1029_v45 = vpop.f32.mrf.mxu3 }
 0x217   : > { %v1030_v46 = vadd.f32 %v1029_v45, %v941_v44 }
 0x219   : > { %1069 = vst [vmem:[%s1659_s10 + $0xd8] sm:$0xff] %v1030_v46 }
 0x21c   : > { %v943_v47 = vpop.f32.mrf.mxu2 }
 0x21d   : > { %v944_v48 = vadd.f32 %v1652_v21, %v943_v47  ;;  %v1032_v49 = vpop.f32.mrf.mxu3 }
 0x21f   : > { %v1033_v50 = vadd.f32 %v1032_v49, %v944_v48 }
 0x221   : > { %1070 = vst [vmem:[%s1659_s10 + $0xe0] sm:$0xff] %v1033_v50 }
 0x224   : > { %v945_v51 = vpop.f32.mrf.mxu2 }
 0x225   : > { %v946_v52 = vadd.f32 %v1652_v21, %v945_v51  ;;  %v1034_v53 = vpop.f32.mrf.mxu3 }
 0x227   : > { %v1035_v12 = vadd.f32 %v1034_v53, %v946_v52 }
 0x229   : > { %1071 = vst [vmem:[%s1659_s10 + $0xe8] sm:$0xff] %v1035_v12 }
 0x22c   : > { %v948_v13 = vpop.f32.mrf.mxu2 }
 0x22d   : > { %v949_v54 = vadd.f32 %v1652_v21, %v948_v13  ;;  %v1037_v55 = vpop.f32.mrf.mxu3 }
 0x22f   : > { %v1038_v56 = vadd.f32 %v1037_v55, %v949_v54 }
 0x231   : > { %1072 = vst [vmem:[%s1659_s10 + $0xf0] sm:$0xff] %v1038_v56 }
 0x234   : > { %v950_v57 = vpop.f32.mrf.mxu2 }
 0x235   : > { %v951_v58 = vadd.f32 %v1652_v21, %v950_v57  ;;  %v1039_v59 = vpop.f32.mrf.mxu3 }
 0x237   : > { %v1040_v60 = vadd.f32 %v1039_v59, %v951_v58 }
 0x239   : > { %1073 = vst [vmem:[%s1659_s10 + $0xf8] sm:$0xff] %v1040_v60 }
 0x23a PF: > { %s15_s18 = sadd.s32 1, %s1396_s18  }
 0x23b   : > { %p12_p4 = scmp.ge.s32.totalorder %s15_s18, 4  }
 0x23d   :  { %14 = sbr.rel (!%p12_p4) target bundleno = 1 (0x1), region = 70 }

</bundles_post_ra>
